<compile_context>
chip_gen: v6e
topology: v6e:2x2x1
jax: 0.10.0
libtpu: 0.0.40
codegen_flags: <defaults>
</compile_context>

<pallas_src>
import jax
import jax.numpy as jnp
from jax.experimental import pallas as pl
from jax.experimental.pallas import tpu as pltpu


def _cdiv(a, b):
    return -(-a // b)


def _conv1x1_bias_relu_kernel(x_ref, w_ref, bias_ref, o_ref):
    """One grid step = (batch n) x (spatial tile p) x (Cout tile c).

    x_ref   : (1, Cin, TP)   input tile (NCHW, spatial flattened)
    w_ref   : (TCo, Cin)     conv weight with BN scale pre-folded
    bias_ref: (TCo, 1)       folded bias = beta + (conv_bias - mean) * scale
    o_ref   : (1, TCo, TP)
    """
    y = jnp.dot(w_ref[...], x_ref[0], preferred_element_type=jnp.float32)  # MXU
    o_ref[0] = jnp.maximum(y + bias_ref[...], 0.0).astype(o_ref.dtype)


def _tpu_vmem_capacity_bytes():
    try:
        return int(pltpu.get_tpu_info().vmem_capacity_bytes)
    except Exception:
        return 64 << 20            # conservative: v7x per-TensorCore VMEM


def _pick_cout_tile(Cout, Cin, max_weight_bytes):
    """Largest divisor of Cout (multiple of 8) whose weight slab fits the budget."""
    if Cout * (Cin + 1) * 4 <= max_weight_bytes:
        return Cout
    best = None
    for t in range(8, Cout, 8):
        if Cout % t == 0 and 2 * t * (Cin + 1) * 4 <= max_weight_bytes:
            best = t
    return best if best is not None else Cout


def _pick_spatial_tile(P, bytes_per_lane, vmem_budget, n_parallel_units, min_steps=8):
    """Lane-dense spatial tile: a multiple of 128, sized against a VMEM budget.

    Prefers the largest candidate, but backs off (when possible) so the parallel
    grid has >= min_steps steps (keeps both v7x TensorCores + pipeline fed).
    """
    tp_cap = max(128, (vmem_budget // max(bytes_per_lane, 1)) // 128 * 128)
    if P % 128 != 0 and P <= 512:
        return P                              # full-dim block (any width allowed)
    if P % 128 == 0:
        cands = [t for t in range(128, min(P, tp_cap) + 1, 128) if P % t == 0]
    else:
        # Unaligned P: lane-dense tile, cdiv grid with a partial last block.
        hi = min(tp_cap, (P // 128) * 128)
        cands = list(range(128, hi + 1, 128))
    if not cands:
        cands = [128]
    fed = [t for t in cands if n_parallel_units * _cdiv(P, t) >= min_steps]
    return fed[-1] if fed else cands[-1]


def _const_spec(shape, index_map, single_buffer):
    """BlockSpec for an operand; single-buffer it when its block index is constant."""
    if single_buffer:
        try:
            return pl.BlockSpec(shape, index_map, pipeline_mode=pl.Buffered(1))
        except TypeError:
            pass
    return pl.BlockSpec(shape, index_map)


def conv1x1_bn_relu(x_nchw, w_oi, scale, bias):
    """x_nchw: (N, Cin, H, W) f32 -> (N, Cout, H, W) f32 (1x1 conv, folded BN, ReLU)."""
    N, Cin, H, W = x_nchw.shape
    Cout = w_oi.shape[0]
    P = H * W

    # Fold the BN scale into the conv weight (host-side, one-time (Cout, Cin) op).
    w2d = (w_oi.reshape(Cout, Cin) * scale.reshape(Cout, 1)).astype(jnp.float32)
    bias2d = bias.reshape(Cout, 1).astype(jnp.float32)
    x_flat = x_nchw.reshape(N, Cin, P)         # free reshape, no copy / transpose

    # --- VMEM-budget-driven tile selection (chip-generation aware) -------------
    phys = _tpu_vmem_capacity_bytes()
    budget = min(phys // 2, 48 << 20)          # headroom for scratch / semaphores
    tco = _pick_cout_tile(Cout, Cin, budget // 2)
    single_buffer_consts = (tco == Cout)       # constant block index -> 1 buffer
    const_bufs = 1 if single_buffer_consts else 2
    w_bytes = const_bufs * tco * (Cin + 1) * 4
    lane_bytes = 2 * (Cin + tco) * 4           # x + out, double-buffered, f32
    tp = _pick_spatial_tile(P, lane_bytes,
                            max(budget - w_bytes, 128 * lane_bytes),
                            N * (Cout // tco))

    est = w_bytes + lane_bytes * tp
    vmem_limit = int(min(max(32 << 20, est + (8 << 20)), phys - (8 << 20)))

    grid = (N, _cdiv(P, tp), Cout // tco)

    out_flat = pl.pallas_call(
        _conv1x1_bias_relu_kernel,
        out_shape=jax.ShapeDtypeStruct((N, Cout, P), jnp.float32),
        grid=grid,
        in_specs=[
            # x block index is constant along the Cout axis -> fetched once per (n, p).
            pl.BlockSpec((1, Cin, tp), lambda n, p, c: (n, 0, p)),
            _const_spec((tco, Cin), lambda n, p, c: (c, 0), single_buffer_consts),
            _const_spec((tco, 1), lambda n, p, c: (c, 0), single_buffer_consts),
        ],
        out_specs=pl.BlockSpec((1, tco, tp), lambda n, p, c: (n, c, p)),
        compiler_params=pltpu.CompilerParams(
            dimension_semantics=("parallel", "parallel", "parallel"),
            vmem_limit_bytes=vmem_limit),
    )(x_flat, w2d, bias2d)

    return out_flat.reshape(N, Cout, H, W)


def _fold_bn(conv_bias, gamma, beta, running_mean, running_var, eps=1e-5):
    scale = gamma / jnp.sqrt(running_var + eps)
    bias = beta + (conv_bias - running_mean) * scale
    return scale, bias


def conv1bn_forward(x_nchw, params, *, bn=True, eps=1e-5):
    """Conv1BN.forward: 1x1 conv -> (optional) BN (running stats) -> ReLU. NCHW in/out."""
    if bn:
        scale, bias = _fold_bn(params["b"], params["gamma"], params["beta"],
                               params["mean"], params["var"], eps)
    else:
        scale = jnp.ones_like(params["b"])
        bias = params["b"]
    return conv1x1_bn_relu(x_nchw, params["w"], scale, bias)


def init_params(key, in_ch, out_ch):
    """Deterministic synthetic parameters for Conv1BN(in_, out)."""
    ks = jax.random.split(key, 6)
    return {
        # 1x1 conv weight stored as (Cout, Cin) (the PyTorch (O, I, 1, 1) squeezed)
        "w": 0.1 * jax.random.normal(ks[0], (out_ch, in_ch), jnp.float32),
        "b": 0.1 * jax.random.normal(ks[1], (out_ch,), jnp.float32),
        "gamma": 1.0 + 0.1 * jax.random.normal(ks[2], (out_ch,), jnp.float32),
        "beta": 0.1 * jax.random.normal(ks[3], (out_ch,), jnp.float32),
        "mean": 0.05 * jax.random.normal(ks[4], (out_ch,), jnp.float32),
        "var": jnp.abs(1.0 + 0.1 * jax.random.normal(ks[5], (out_ch,), jnp.float32)),
    }


def _reference_forward(x_nchw, params, *, bn=True, eps=1e-5):
    """Pure-JAX reference for correctness check (1x1 conv == channel einsum)."""
    y = jnp.einsum("oc,nchw->nohw", params["w"], x_nchw) + params["b"][None, :, None, None]
    if bn:
        s = params["gamma"] / jnp.sqrt(params["var"] + eps)
        y = (y - params["mean"][None, :, None, None]) * s[None, :, None, None] \
            + params["beta"][None, :, None, None]
    return jnp.maximum(y, 0.0)


if __name__ == "__main__":
    key = jax.random.PRNGKey(0)
    kx, kp = jax.random.split(key)

    N, Cin, Cout, H, W = 2, 4, 8, 16, 16
    x = jax.random.normal(kx, (N, Cin, H, W), jnp.float32)   # NCHW, like PyTorch
    params = init_params(kp, Cin, Cout)

    out = conv1bn_forward(x, params)
    out = jax.block_until_ready(out)

    ref = _reference_forward(x, params)
    assert out.shape == (N, Cout, H, W)
    assert jnp.allclose(out, ref, atol=1e-3, rtol=1e-3)

    print("KERNEL_OK")
</pallas_src>

<mosaic_0001>
module attributes {stable_mosaic.version = 11 : i64} {
  func.func @_conv1x1_bias_relu_kernel(%arg0: i32, %arg1: i32, %arg2: i32, %arg3: memref<1x4x256xf32, #tpu.memory_space<vmem>>, %arg4: memref<8x4xf32, #tpu.memory_space<vmem>>, %arg5: memref<8x1xf32, #tpu.memory_space<vmem>>, %arg6: memref<1x8x256xf32, #tpu.memory_space<vmem>>) attributes {dimension_semantics = [#tpu.dimension_semantics<parallel>, #tpu.dimension_semantics<parallel>, #tpu.dimension_semantics<parallel>], iteration_bounds = array<i64: 2, 1, 1>, scalar_prefetch = 0 : i64, scratch_operands = 0 : i64, tpu.core_type = #tpu.core_type<tc>, window_params = [{transform_indices = @transform_0, window_bounds = array<i64: 1, 4, 256>}, {pipeline_mode = #tpu.pipeline_mode<synchronous>, transform_indices = @transform_1, window_bounds = array<i64: 8, 4>}, {pipeline_mode = #tpu.pipeline_mode<synchronous>, transform_indices = @transform_2, window_bounds = array<i64: 8, 1>}, {transform_indices = @transform_3, window_bounds = array<i64: 1, 8, 256>}]} {
    %c0 = arith.constant 0 : index
    %c0_0 = arith.constant 0 : index
    %0 = vector.load %arg4[%c0, %c0_0] : memref<8x4xf32, #tpu.memory_space<vmem>>, vector<8x4xf32>
    %c0_1 = arith.constant 0 : index
    %c0_2 = arith.constant 0 : index
    %c0_3 = arith.constant 0 : index
    %1 = vector.load %arg3[%c0_1, %c0_2, %c0_3] : memref<1x4x256xf32, #tpu.memory_space<vmem>>, vector<1x4x256xf32>
    %2 = vector.shape_cast %1 : vector<1x4x256xf32> to vector<4x256xf32>
    %cst = arith.constant dense<0.000000e+00> : vector<8x256xf32>
    %3 = tpu.matmul %0, %2, %cst {dimension_numbers = #tpu.dot_dimension_numbers<[1], [0], [0], [1], [0, 0, 1, 1], [], []>} : vector<8x4xf32>, vector<4x256xf32>, vector<8x256xf32> -> vector<8x256xf32>
    %c0_4 = arith.constant 0 : index
    %c0_5 = arith.constant 0 : index
    %4 = vector.load %arg5[%c0_4, %c0_5] : memref<8x1xf32, #tpu.memory_space<vmem>>, vector<8x1xf32>
    %5 = vector.broadcast %4 : vector<8x1xf32> to vector<8x256xf32>
    %6 = arith.addf %3, %5 : vector<8x256xf32>
    %cst_6 = arith.constant 0.000000e+00 : f32
    %7 = vector.broadcast %cst_6 : f32 to vector<8x256xf32>
    %8 = arith.maximumf %6, %7 : vector<8x256xf32>
    %c0_7 = arith.constant 0 : index
    %c0_8 = arith.constant 0 : index
    %c0_9 = arith.constant 0 : index
    %9 = vector.load %arg6[%c0_7, %c0_8, %c0_9] : memref<1x8x256xf32, #tpu.memory_space<vmem>>, vector<1x8x256xf32>
    %10 = vector.shape_cast %9 : vector<1x8x256xf32> to vector<8x256xf32>
    %11 = vector.shape_cast %8 : vector<8x256xf32> to vector<1x8x256xf32>
    tpu.vector_store %arg6[%c0_7, %c0_8, %c0_9], %11 {strides = array<i32>} : memref<1x8x256xf32, #tpu.memory_space<vmem>>, vector<1x8x256xf32>,
    return
  }
  func.func @transform_0(%arg0: i32, %arg1: i32, %arg2: i32) -> (i32, i32, i32) {
    %c0_i32 = arith.constant 0 : i32
    %c0_i32_0 = arith.constant 0 : i32
    return %arg0, %c0_i32, %arg1 : i32, i32, i32
  }
  func.func @transform_1(%arg0: i32, %arg1: i32, %arg2: i32) -> (i32, i32) {
    %c0_i32 = arith.constant 0 : i32
    %c0_i32_0 = arith.constant 0 : i32
    return %arg2, %c0_i32 : i32, i32
  }
  func.func @transform_2(%arg0: i32, %arg1: i32, %arg2: i32) -> (i32, i32) {
    %c0_i32 = arith.constant 0 : i32
    %c0_i32_0 = arith.constant 0 : i32
    return %arg2, %c0_i32 : i32, i32
  }
  func.func @transform_3(%arg0: i32, %arg1: i32, %arg2: i32) -> (i32, i32, i32) {
    %c0_i32 = arith.constant 0 : i32
    return %arg0, %arg2, %arg1 : i32, i32, i32
  }
}

</mosaic_0001>

<bundles_post_ra>
// kernel: tpu_custom_call.1
= control target key start
LH: loop header
LB: loop body
LE: loop exit
PB: predicated region body
PF: predicated region fallthrough
CT: control target
= control target key end

     0   :  { %8 = vsyncpa [#allocation3], 0  ;;  %s752_s0 = inlined_call_operand.vmem [shape: f32[2,4,256], index: 0, kind: input, shape index: {}]   ;;  %s753_s1 = inlined_call_operand.vmem [shape: f32[8,4], index: 1, kind: input, shape index: {}]   ;;  %s754_s2 = inlined_call_operand.vmem [shape: f32[8,1], index: 2, kind: input, shape index: {}]   ;;  %s755_s3 = inlined_call_operand.hbm [shape: f32[2,8,256], index: 3, kind: output, shape index: {}]  }
   0x1   :  { %10 = vsyncpa [#allocation3 + $0x1], 0  ;;  %s647_s12 = smov 0   ;;  %s649_s13 = smov 0  }
   0x2   :  { %s651_s14 = smov 0   ;;  %s653_s15 = smov 0  }
   0x3   :  { %s655_s16 = smov 0   ;;  %s657_s17 = smov 0  }
   0x4 LB: > { %s467_s18 = sadd.s32 4294967295, %s622_s17   ;;  %s468_s19 = sadd.s32 4294967294, %s622_s17   ;;  %s622_s17 = sphi %s657_s17, %s16_s17   ;;  %s618_s16 = sphi %s655_s16, %s762_s16   ;;  %s614_s15 = sphi %s653_s15, %s761_s15   ;;  %s610_s14 = sphi %s651_s14, %s760_s14   ;;  %s606_s13 = sphi %s649_s13, %s759_s13   ;;  %s602_s12 = sphi %s647_s12, %s758_s12  }
   0x5   : > { %s35_s20 = sadd.s32 1, %s618_s16  ;;  %s126_s21 = sadd.s32 1, %s610_s14 }
   0x6   : > { %p37_p0 = scmp.ge.s32.totalorder %s35_s20, 2  ;;  %p136_p1 = scmp.ne.s32.totalorder %s610_s14, %s606_s13 }
   0x7   : > { %p137_p2 = scmp.eq.s32.totalorder %s467_s18, 1  ;;  %p142_p3 = scmp.ne.s32.totalorder %s606_s13, %s602_s12 }
   0x8   : > { %s764_s20 = smov (%p37_p0, %s35_s20), 0  ;;  %p143_p5 = scmp.eq.s32.totalorder %s468_s19, 1 }
   0x9   : > { %p687_p4 = por %p137_p2, %p136_p1  ;;  %s119_s23 = ssub.s32 %s618_s16, %s764_s20 }
   0xa   : > { %p473_p6 = scmp.ge.s32.totalorder %s622_s17, 1  ;;  %p124_p7 = scmp.eq.s32.totalorder %s119_s23, 0 }
   0xb   : > { %p694_p8 = por %p143_p5, %p142_p3  ;;  %p188_p9 = scmp.lt.s32.totalorder %s622_s17, 3 }
   0xc   : > { %s700_s25 = scalar_select %p124_p7, %s610_s14, %s126_s21  }
   0xd   : > { %p189_p10 = pnand %p473_p6, %p188_p9 }
   0xe   : > { %p225_p11 = scmp.lt.s32.totalorder (!%p189_p10), %s614_s15, 1  ;;  %s221_s8 = sand.u32 (!%p189_p10), 1, %s606_s13  }
   0xf   : > { %192 = sbr.rel (%p189_p10) target bundleno = 241 (0xf1), region = 32  ;;  %s474_s9 = sshll.u32 (!%p189_p10), %s221_s8, 4 }
  0x10   : > { %s486_s10 = sshll.u32 (!%p189_p10), %s614_s15, 8  ;;  %s223_s11 = scalar_lea.vmem (!%p189_p10), [#allocation2], %s474_s9 }
  0x11   : > { %s356_s18 = sshll.u32 (!%p189_p10), %s223_s11, 4  ;;  %s354_s23 = scalar_lea.hbm (!%p189_p10), %s755_s3, %s486_s10  ;;  %s357_s18 = int_to_ptr.vmem [resolvable:$true] %s356_s18 }
  0x12   : > { %s338_s26 = scalar_lea.sflag (!%p189_p10), [#allocation3], %s221_s8  ;;  %s546_s27 = scalar_lea.vmem (!%p189_p10), %s357_s18, 256 }
  0x13   : > { %p547_p12 = scmp.ne.s32.totalorder (!%p189_p10), %s357_s18, %s546_s27 }
  0x14   : > { %v624_v0 = vmov 0.0   ;;  %v625_v1 = vmov 0   ;;  %v245_v2 = vld [vmem:[%s754_s2] sm:$0xff]  ;;  %s226_s28 = scalar_select %p225_p11, %s614_s15, 1  ;;  %vm257_vm0 = vcmask 1043456   ;;  %vm253_vm1 = vcmask 31744  }
  0x15   : > { %326 = vmatprep.mubr.f32.mxu0 %v624_v0  ;;  %544 = vset.pattern.permute.xlu0 %v625_v1  ;;  %v243_v5 = vld [vmem:[%s753_s1] sm:$0xff]  ;;  %p548_p13 = pnand %p547_p12, %p687_p4 }
  0x16   : > { %248 = vperm.xlu0 %544, %v245_v2   ;;  %s485_s29 = sshll.u32 %s226_s28, 3  ;;  %s626_s28 = smov [#allocation2]  }
  0x17   : > { %s232_s5 = scalar_lea.vmem %s752_s0, %s485_s29  ;;  %p549_p0 = pneg %p548_p13 }
  0x18   : > { %v244_v3 = vld [vmem:[%s232_s5] sm:$0xff]  ;;  %s550_s15 = sshll.u32 %s626_s28, 4  ;;  %s551_s15 = int_to_ptr.vmem [resolvable:$false] %s550_s15 }
  0x19   : > { %v252_v4 = vcombine.high %v244_v3, %v244_v3  ;;  %s552_s29 = scalar_lea.vmem %s551_s15, 512  ;;  %p553_p1 = scmp.lt.s32.totalorder %s357_s18, %s551_s15 }
  0x1a   : > { %p554_p2 = scmp.lt.s32.totalorder %s552_s29, %s546_s27 }
  0x1b   : > { %477 = vmatprep.subr.msk.mxu0 %vm257_vm0, %v252_v4 }
  0x1c   : > { %478 = vmatpush1.msk.msra.mxu0 %vm257_vm0, %v244_v3  ;;  %p555_p3 = por %p554_p2, %p553_p1 }
  0x1d   : > { %479 = vmatmul.mubr.msk.f32.vlgmr.msra.gmra.mxu0 %vm253_vm1, %v243_v5 }
  0x1e   : > { %p556_p5 = pnand %p555_p3, %p549_p0 }
  0x91   : > { %v249_v6 = vpop.permute.xlu0 %248 }
  0xdd   : > { %v328_v7 = vpop.f32.mrf.mxu0 }
  0xde   : > { %v329_v8 = vadd.f32 %v328_v7, %v249_v6 }
  0xdf   : > { %v330_v9 = vpop.f32.mrf.mxu0 }
  0xe0   : > { %v333_v10 = vmax.f32 %v329_v8, 0.0  ;;  %v331_v11 = vadd.f32 %v330_v9, %v249_v6 }
  0xe2   : > { %335 = vst [vmem:[%s223_s11] sm:$0xff] %v333_v10  ;;  %v334_v12 = vmax.f32 %v331_v11, 0.0 }
  0xe4   : > { %336 = vst [vmem:[%s223_s11 + $0x8] sm:$0xff] %v334_v12 }
  0xe5   : > { %559 = shalt.err (!%p556_p5)
}
  0xe6   : > { %s560_s30 = scalar_lea.hbm %s354_s23, 256  ;;  %s564_s6 = scalar_lea.hbm %s755_s3, 512 }
  0xe7   : > { %p561_p6 = scmp.ne.s32.totalorder %s354_s23, %s560_s30  ;;  %p565_p10 = scmp.lt.s32.totalorder %s354_s23, %s755_s3 }
  0xe8   : > { %p566_p11 = scmp.lt.s32.totalorder %s564_s6, %s560_s30 }
  0xe9   : > { %p562_p7 = pnand %p561_p6, %p687_p4 }
  0xea   : > { %p567_p12 = por %p566_p11, %p565_p10 }
  0xeb   : > { %p563_p9 = pneg %p562_p7 }
  0xed   : > { %p568_p13 = pnand %p567_p12, %p563_p9 }
  0xef   : > { %571 = shalt.err (!%p568_p13)
}
  0xf0   : > { %487 = dma.vmem_to_hbm [thread:$0]  (%p687_p4), %s357_s18, 256, %s354_s23, %s338_s26  }
  0xf1 PF: > { %p493_p0 = scmp.ge.s32.totalorder %s622_s17, 2  ;;  %s368_s9 = sand.u32 1, %s602_s12  }
  0xf2   : > { %s369_s10 = scalar_lea.sflag [#allocation3], %s368_s9 }
  0xf3   : > { %p490_p1 = pnand %p493_p0, %p694_p8 }
  0xf5   : > { %p491_p2 = pneg %p490_p1 }
  0xf7   : > { %597 = dma.done.wait (%p491_p2), %s369_s10, 256  }
  0xf8   : > { %599 = vsyncadd (%p491_p2), %s369_s10, 4294967040  ;;  %s16_s17 = sadd.s32 1, %s622_s17   ;;  %s758_s12 = smov %s606_s13 }
  0xf9   : > { %p13_p3 = scmp.ge.s32.totalorder %s16_s17, 4   ;;  %s759_s13 = smov %s610_s14 }
  0xfa   : > { %s760_s14 = smov %s700_s25  ;;  %s761_s15 = smov %s618_s16 }
  0xfb   : > { %s762_s16 = smov %s764_s20  ;;  %15 = sbr.rel (!%p13_p3) target bundleno = 4 (0x4), region = 73 }
 0x100   :  { %374 = vsyncpa [#allocation3], 1 }
 0x101   :  { %376 = vsyncpa [#allocation3 + $0x1], 1 }

</bundles_post_ra>
